<compile_context>
chip_gen: v5e
topology: v5e:2x2
jax: 0.10.0
libtpu: 0.0.40
codegen_flags: <defaults>
</compile_context>

<pallas_src>
import functools

import jax
import jax.numpy as jnp
from jax.experimental import pallas as pl
from jax.experimental.pallas import tpu as pltpu


# ----------------------------- kernel ------------------------------------- #
def _mlp_kernel(x_ref, w1_ref, b1_ref, w2_ref, b2_ref, w3_ref, b3_ref, o_ref):
    # Layer 1: Linear + ReLU  (bf16 MXU matmul, f32 accumulate; VPU bias/relu).
    x = x_ref[...].astype(jnp.bfloat16)          # cast in-kernel (cheap VPU op)
    h1 = jnp.dot(x, w1_ref[...], preferred_element_type=jnp.float32)
    h1 = jnp.maximum(h1 + b1_ref[...], 0.0)
    # Layer 2: Linear + ReLU.
    h2 = jnp.dot(h1.astype(jnp.bfloat16), w2_ref[...],
                 preferred_element_type=jnp.float32)
    h2 = jnp.maximum(h2 + b2_ref[...], 0.0)
    # Layer 3: Linear (logits, no activation).
    out = jnp.dot(h2.astype(jnp.bfloat16), w3_ref[...],
                  preferred_element_type=jnp.float32)
    o_ref[...] = (out + b3_ref[...]).astype(o_ref.dtype)


# ----------------------------- helpers ------------------------------------ #
def _round_up(n, m):
    return ((n + m - 1) // m) * m


def _pad2(a, rows, cols):
    r, c = a.shape
    return jnp.pad(a, ((0, rows - r), (0, cols - c)))


def _tensorcores_per_chip():
    """2 TensorCores per chip on v7x, 1 on v5e/v6e (and on anything unknown)."""
    try:
        kind = jax.devices()[0].device_kind.lower()
    except Exception:
        return 1
    return 2 if ("v7" in kind or "7x" in kind) else 1


def _build_pallas_fn(bt, Bp, D, H1p, H2p, Cp, out_dtype):
    grid = (Bp // bt,)
    out_bytes = jnp.dtype(out_dtype).itemsize

    flops = 2 * Bp * (D * H1p + H1p * H2p + H2p * Cp)
    bytes_accessed = (Bp * D * 4                                   # x (f32, unpadded)
                      + (D * H1p + H1p * H2p + H2p * Cp) * 2       # W (bf16)
                      + (H1p + H2p + Cp) * 4                       # b (f32)
                      + Bp * Cp * out_bytes)                       # out

    # Rough resident-VMEM estimate: double-buffered x/out tiles, resident
    # (constant-index) weights/biases, f32 intermediates; generous headroom.
    # Clamped to stay well inside v7x's 64 MiB physical VMEM while lifting
    # the small scoped defaults on v5e/v6e.
    est = (2 * bt * D * 4 + 2 * bt * Cp * out_bytes
           + 2 * ((D * H1p + H1p * H2p + H2p * Cp) * 2
                  + (H1p + H2p + Cp) * 4)
           + bt * (H1p + H2p) * 4)
    vmem_limit = int(min(max(2 * est + (4 << 20), 16 << 20), 48 << 20))

    return pl.pallas_call(
        _mlp_kernel,
        out_shape=jax.ShapeDtypeStruct((Bp, Cp), out_dtype),
        grid_spec=pltpu.PrefetchScalarGridSpec(
            num_scalar_prefetch=0,
            grid=grid,
            in_specs=[
                pl.BlockSpec((bt, D), lambda i: (i, 0)),      # x tile (unpadded D)
                pl.BlockSpec((D, H1p), lambda i: (0, 0)),     # w1 (resident)
                pl.BlockSpec((1, H1p), lambda i: (0, 0)),     # b1
                pl.BlockSpec((H1p, H2p), lambda i: (0, 0)),   # w2
                pl.BlockSpec((1, H2p), lambda i: (0, 0)),     # b2
                pl.BlockSpec((H2p, Cp), lambda i: (0, 0)),    # w3
                pl.BlockSpec((1, Cp), lambda i: (0, 0)),      # b3
            ],
            out_specs=pl.BlockSpec((bt, Cp), lambda i: (i, 0)),
        ),
        compiler_params=pltpu.CompilerParams(
            dimension_semantics=("parallel",),
            vmem_limit_bytes=vmem_limit,
        ),
        cost_estimate=pl.CostEstimate(
            flops=flops, transcendentals=0, bytes_accessed=bytes_accessed),
    )


# ----------------------------- module wrapper ------------------------------ #
class PallasMLP:
    """fc1 -> ReLU -> fc2 -> ReLU -> fc3, fused into one Pallas TPU kernel.

    Weights are given pre-transposed as [in, out] (== PyTorch x @ W.T + b).
    Weight/bias padding + bf16 casting happens once here and is cached; the
    per-call path (batch pad -> pallas_call -> slice) is a single jitted fn.
    """

    def __init__(self, w1, b1, w2, b2, w3, b3, *,
                 out_dtype=jnp.float32, batch_tile=None):
        D, H1 = w1.shape
        H1b, H2 = w2.shape
        H2b, C = w3.shape
        assert H1b == H1 and H2b == H2
        self.D, self.H1, self.H2, self.C = D, H1, H2, C
        # Feature dims padded to 128 (lane-dense, unmasked output stores).
        # Deliberately NOT 256: true dims are 32-128, extra zero-FLOPs/DMA
        # would cost more than underfilling half the v6e/v7x MXU lanes.
        self.H1p, self.H2p, self.Cp = (_round_up(d, 128) for d in (H1, H2, C))
        self.out_dtype = out_dtype
        self.batch_tile = batch_tile

        # One-time pad + cast (cached across calls; zero-padding is exact:
        # padded weight rows/cols contribute 0, padded bias entries are 0 so
        # ReLU keeps padded hidden columns at 0, padded output cols sliced off).
        self.w1p = _pad2(w1.astype(jnp.bfloat16), D, self.H1p)
        self.w2p = _pad2(w2.astype(jnp.bfloat16), self.H1p, self.H2p)
        self.w3p = _pad2(w3.astype(jnp.bfloat16), self.H2p, self.Cp)
        self.b1p = _pad2(jnp.asarray(b1, jnp.float32).reshape(1, -1), 1, self.H1p)
        self.b2p = _pad2(jnp.asarray(b2, jnp.float32).reshape(1, -1), 1, self.H2p)
        self.b3p = _pad2(jnp.asarray(b3, jnp.float32).reshape(1, -1), 1, self.Cp)

        self._n_tc = _tensorcores_per_chip()
        self._apply = jax.jit(self._forward)

    def _tiling(self, B):
        if self.batch_tile is not None:
            bt = max(8, _round_up(min(self.batch_tile, _round_up(B, 8)), 8))
            return bt, _round_up(B, bt)
        if self._n_tc >= 2:
            # v7x: even multi-step "parallel" grid so both TCs do work.
            bt = max(8, min(256, _round_up(pl.cdiv(B, self._n_tc), 8)))
            steps = _round_up(pl.cdiv(B, bt), self._n_tc)
            return bt, steps * bt
        # v5e / v6e: single TC -> one big tile (grid of 1 step when it fits);
        # avoids ~0.35 us/step pipeline overhead on a microseconds-scale kernel.
        bt = max(8, min(512, _round_up(B, 8)))
        return bt, _round_up(B, bt)

    def _forward(self, x):
        B, D = x.shape
        assert D == self.D, f"expected input feature dim {self.D}, got {D}"
        bt, Bp = self._tiling(B)
        if Bp != B:
            x = jnp.pad(x, ((0, Bp - B), (0, 0)))   # fused inside the jit
        out_p = _build_pallas_fn(bt, Bp, D, self.H1p, self.H2p, self.Cp,
                                 self.out_dtype)(
            x, self.w1p, self.b1p, self.w2p, self.b2p, self.w3p, self.b3p)
        return out_p[:B, :self.C]                   # fused inside the jit

    def __call__(self, x):
        return self._apply(x)

    # TODO(synk): if hidden sizes ever grow so resident bf16 weights approach
    # v7x's 64 MiB VMEM (32 MiB scoped default), add a K-grid axis with an f32
    # accumulator scratch and pl.when init/finalize instead of resident weights.


def init_linear(key, in_features, out_features, dtype=jnp.float32):
    """nn.Linear-style init, U(-1/sqrt(fan_in), 1/sqrt(fan_in)).
    Returns weight pre-transposed to [in, out] and bias [out]."""
    kw, kb = jax.random.split(key)
    bound = 1.0 / (in_features ** 0.5)
    w = jax.random.uniform(kw, (in_features, out_features), dtype,
                           minval=-bound, maxval=bound)
    b = jax.random.uniform(kb, (out_features,), dtype,
                           minval=-bound, maxval=bound)
    return w, b


if __name__ == "__main__":
    # Shapes consistent with the MLP forward:
    #   input_size=64, hidden_sizes=[128, 64], num_classes=32, small batch.
    batch, input_size = 128, 64
    hidden_sizes = (128, 64)
    num_classes = 32

    root = jax.random.PRNGKey(0)
    kx, k1, k2, k3 = jax.random.split(root, 4)

    x = jax.random.normal(kx, (batch, input_size), jnp.float32)
    w1, b1 = init_linear(k1, input_size, hidden_sizes[0])
    w2, b2 = init_linear(k2, hidden_sizes[0], hidden_sizes[1])
    w3, b3 = init_linear(k3, hidden_sizes[1], num_classes)

    model = PallasMLP(w1, b1, w2, b2, w3, b3)   # pads/casts weights once
    out = jax.block_until_ready(model(x))

    # Reference with the same bf16-operand / f32-accumulate math.
    xb = x.astype(jnp.bfloat16)
    ref = jnp.maximum(
        jnp.dot(xb, w1.astype(jnp.bfloat16),
                preferred_element_type=jnp.float32) + b1, 0.0)
    ref = jnp.maximum(
        jnp.dot(ref.astype(jnp.bfloat16), w2.astype(jnp.bfloat16),
                preferred_element_type=jnp.float32) + b2, 0.0)
    ref = jnp.dot(ref.astype(jnp.bfloat16), w3.astype(jnp.bfloat16),
                  preferred_element_type=jnp.float32) + b3

    assert out.shape == (batch, num_classes)
    assert out.dtype == jnp.float32
    assert jnp.allclose(out, ref, atol=1e-2, rtol=1e-2)

    print("KERNEL_OK")
</pallas_src>

<mosaic_0001>
module attributes {stable_mosaic.version = 11 : i64} {
  func.func @_mlp_kernel(%arg0: i32, %arg1: memref<128x64xf32, #tpu.memory_space<vmem>>, %arg2: memref<64x128xbf16, #tpu.memory_space<vmem>>, %arg3: memref<1x128xf32, #tpu.memory_space<vmem>>, %arg4: memref<128x128xbf16, #tpu.memory_space<vmem>>, %arg5: memref<1x128xf32, #tpu.memory_space<vmem>>, %arg6: memref<128x128xbf16, #tpu.memory_space<vmem>>, %arg7: memref<1x128xf32, #tpu.memory_space<vmem>>, %arg8: memref<128x128xf32, #tpu.memory_space<vmem>>) attributes {dimension_semantics = [#tpu.dimension_semantics<parallel>], iteration_bounds = array<i64: 1>, scalar_prefetch = 0 : i64, scratch_operands = 0 : i64, tpu.core_type = #tpu.core_type<tc>, window_params = [{transform_indices = @transform_0, window_bounds = array<i64: 128, 64>}, {pipeline_mode = #tpu.pipeline_mode<synchronous>, transform_indices = @transform_1, window_bounds = array<i64: 64, 128>}, {pipeline_mode = #tpu.pipeline_mode<synchronous>, transform_indices = @transform_2, window_bounds = array<i64: 1, 128>}, {pipeline_mode = #tpu.pipeline_mode<synchronous>, transform_indices = @transform_3, window_bounds = array<i64: 128, 128>}, {pipeline_mode = #tpu.pipeline_mode<synchronous>, transform_indices = @transform_4, window_bounds = array<i64: 1, 128>}, {pipeline_mode = #tpu.pipeline_mode<synchronous>, transform_indices = @transform_5, window_bounds = array<i64: 128, 128>}, {pipeline_mode = #tpu.pipeline_mode<synchronous>, transform_indices = @transform_6, window_bounds = array<i64: 1, 128>}, {transform_indices = @transform_7, window_bounds = array<i64: 128, 128>}]} {
    %c0 = arith.constant 0 : index
    %c0_0 = arith.constant 0 : index
    %0 = vector.load %arg1[%c0, %c0_0] : memref<128x64xf32, #tpu.memory_space<vmem>>, vector<128x64xf32>
    %1 = arith.truncf %0 : vector<128x64xf32> to vector<128x64xbf16>
    %c0_1 = arith.constant 0 : index
    %c0_2 = arith.constant 0 : index
    %2 = vector.load %arg2[%c0_1, %c0_2] : memref<64x128xbf16, #tpu.memory_space<vmem>>, vector<64x128xbf16>
    %cst = arith.constant dense<0.000000e+00> : vector<128x128xf32>
    %3 = tpu.matmul %1, %2, %cst {dimension_numbers = #tpu.dot_dimension_numbers<[1], [0], [0], [1], [0, 0, 1, 1], [], []>} : vector<128x64xbf16>, vector<64x128xbf16>, vector<128x128xf32> -> vector<128x128xf32>
    %c0_3 = arith.constant 0 : index
    %c0_4 = arith.constant 0 : index
    %4 = vector.load %arg3[%c0_3, %c0_4] : memref<1x128xf32, #tpu.memory_space<vmem>>, vector<1x128xf32>
    %5 = vector.broadcast %4 : vector<1x128xf32> to vector<128x128xf32>
    %6 = arith.addf %3, %5 : vector<128x128xf32>
    %cst_5 = arith.constant 0.000000e+00 : f32
    %7 = vector.broadcast %cst_5 : f32 to vector<128x128xf32>
    %8 = arith.maximumf %6, %7 : vector<128x128xf32>
    %9 = arith.truncf %8 : vector<128x128xf32> to vector<128x128xbf16>
    %c0_6 = arith.constant 0 : index
    %c0_7 = arith.constant 0 : index
    %10 = vector.load %arg4[%c0_6, %c0_7] : memref<128x128xbf16, #tpu.memory_space<vmem>>, vector<128x128xbf16>
    %cst_8 = arith.constant dense<0.000000e+00> : vector<128x128xf32>
    %11 = tpu.matmul %9, %10, %cst_8 {dimension_numbers = #tpu.dot_dimension_numbers<[1], [0], [0], [1], [0, 0, 1, 1], [], []>} : vector<128x128xbf16>, vector<128x128xbf16>, vector<128x128xf32> -> vector<128x128xf32>
    %c0_9 = arith.constant 0 : index
    %c0_10 = arith.constant 0 : index
    %12 = vector.load %arg5[%c0_9, %c0_10] : memref<1x128xf32, #tpu.memory_space<vmem>>, vector<1x128xf32>
    %13 = vector.broadcast %12 : vector<1x128xf32> to vector<128x128xf32>
    %14 = arith.addf %11, %13 : vector<128x128xf32>
    %cst_11 = arith.constant 0.000000e+00 : f32
    %15 = vector.broadcast %cst_11 : f32 to vector<128x128xf32>
    %16 = arith.maximumf %14, %15 : vector<128x128xf32>
    %17 = arith.truncf %16 : vector<128x128xf32> to vector<128x128xbf16>
    %c0_12 = arith.constant 0 : index
    %c0_13 = arith.constant 0 : index
    %18 = vector.load %arg6[%c0_12, %c0_13] : memref<128x128xbf16, #tpu.memory_space<vmem>>, vector<128x128xbf16>
    %cst_14 = arith.constant dense<0.000000e+00> : vector<128x128xf32>
    %19 = tpu.matmul %17, %18, %cst_14 {dimension_numbers = #tpu.dot_dimension_numbers<[1], [0], [0], [1], [0, 0, 1, 1], [], []>} : vector<128x128xbf16>, vector<128x128xbf16>, vector<128x128xf32> -> vector<128x128xf32>
    %c0_15 = arith.constant 0 : index
    %c0_16 = arith.constant 0 : index
    %20 = vector.load %arg7[%c0_15, %c0_16] : memref<1x128xf32, #tpu.memory_space<vmem>>, vector<1x128xf32>
    %21 = vector.broadcast %20 : vector<1x128xf32> to vector<128x128xf32>
    %22 = arith.addf %19, %21 : vector<128x128xf32>
    %c0_17 = arith.constant 0 : index
    %c0_18 = arith.constant 0 : index
    %23 = vector.load %arg8[%c0_17, %c0_18] : memref<128x128xf32, #tpu.memory_space<vmem>>, vector<128x128xf32>
    tpu.vector_store %arg8[%c0_17, %c0_18], %22 {strides = array<i32>} : memref<128x128xf32, #tpu.memory_space<vmem>>, vector<128x128xf32>,
    return
  }
  func.func @transform_0(%arg0: i32) -> (i32, i32) {
    %c0_i32 = arith.constant 0 : i32
    %c0_i32_0 = arith.constant 0 : i32
    return %arg0, %c0_i32 : i32, i32
  }
  func.func @transform_1(%arg0: i32) -> (i32, i32) {
    %c0_i32 = arith.constant 0 : i32
    %c0_i32_0 = arith.constant 0 : i32
    %c0_i32_1 = arith.constant 0 : i32
    return %c0_i32, %c0_i32_0 : i32, i32
  }
  func.func @transform_2(%arg0: i32) -> (i32, i32) {
    %c0_i32 = arith.constant 0 : i32
    %c0_i32_0 = arith.constant 0 : i32
    %c0_i32_1 = arith.constant 0 : i32
    return %c0_i32, %c0_i32_0 : i32, i32
  }
  func.func @transform_3(%arg0: i32) -> (i32, i32) {
    %c0_i32 = arith.constant 0 : i32
    %c0_i32_0 = arith.constant 0 : i32
    %c0_i32_1 = arith.constant 0 : i32
    return %c0_i32, %c0_i32_0 : i32, i32
  }
  func.func @transform_4(%arg0: i32) -> (i32, i32) {
    %c0_i32 = arith.constant 0 : i32
    %c0_i32_0 = arith.constant 0 : i32
    %c0_i32_1 = arith.constant 0 : i32
    return %c0_i32, %c0_i32_0 : i32, i32
  }
  func.func @transform_5(%arg0: i32) -> (i32, i32) {
    %c0_i32 = arith.constant 0 : i32
    %c0_i32_0 = arith.constant 0 : i32
    %c0_i32_1 = arith.constant 0 : i32
    return %c0_i32, %c0_i32_0 : i32, i32
  }
  func.func @transform_6(%arg0: i32) -> (i32, i32) {
    %c0_i32 = arith.constant 0 : i32
    %c0_i32_0 = arith.constant 0 : i32
    %c0_i32_1 = arith.constant 0 : i32
    return %c0_i32, %c0_i32_0 : i32, i32
  }
  func.func @transform_7(%arg0: i32) -> (i32, i32) {
    %c0_i32 = arith.constant 0 : i32
    %c0_i32_0 = arith.constant 0 : i32
    return %arg0, %c0_i32 : i32, i32
  }
}

</mosaic_0001>

<bundles_post_ra>
// kernel: _forward.1
= control target key start
LH: loop header
LB: loop body
LE: loop exit
PB: predicated region body
PF: predicated region fallthrough
CT: control target
= control target key end

     0   :  { %vm87_vm0 = vcmask 523264   ;;  %s821_s1 = inlined_call_operand.vmem [shape: bf16[64,128], index: 1, kind: input, shape index: {}]   ;;  %s822_s2 = inlined_call_operand.vmem [shape: f32[1,128], index: 2, kind: input, shape index: {}]   ;;  %s823_s0 = inlined_call_operand.vmem [shape: f32[128,64], index: 0, kind: input, shape index: {}]   ;;  %s824_s3 = inlined_call_operand.vmem [shape: bf16[128,128], index: 3, kind: input, shape index: {}]   ;;  %s825_s4 = inlined_call_operand.vmem [shape: f32[1,128], index: 4, kind: input, shape index: {}]   ;;  %s826_s5 = inlined_call_operand.vmem [shape: bf16[128,128], index: 5, kind: input, shape index: {}]   ;;  %s827_s6 = inlined_call_operand.vmem [shape: f32[1,128], index: 6, kind: input, shape index: {}]   ;;  %s828_s7 = inlined_call_operand.vmem [shape: f32[128,128], index: 7, kind: output, shape index: {}]  }
   0x1   :  { %v554_v0 = vld [vmem:[%s821_s1 + $0x18] sm:$0xff]  ;;  %v553_v1 = vld [vmem:[%s821_s1 + $0x10] sm:$0xff]  ;;  %v552_v2 = vld [vmem:[%s821_s1 + $0x8] sm:$0xff] }
   0x2   :  { %116 = vmatpush.bf16.msra.mxu0 %v554_v0  ;;  %v551_v3 = vld [vmem:[%s821_s1] sm:$0xff]  ;;  %v28_v5 = vld [vmem:[%s823_s0 + $0x8] sm:$0xff]  ;;  %v29_v7 = vld [vmem:[%s823_s0 + $0x10] sm:$0xff] }
   0x3   :  { %v27_v4 = vld [vmem:[%s823_s0] sm:$0xff]  ;;  %v30_v8 = vld [vmem:[%s823_s0 + $0x18] sm:$0xff]  ;;  %v32_v11 = vld [vmem:[%s823_s0 + $0x28] sm:$0xff] }
   0x4   :  { %v43_v6 = vpack.c.bf16 %v28_v5, %v27_v4  ;;  %v44_v9 = vpack.c.bf16 %v30_v8, %v29_v7  ;;  %v31_v10 = vld [vmem:[%s823_s0 + $0x20] sm:$0xff]  ;;  %v33_v13 = vld [vmem:[%s823_s0 + $0x30] sm:$0xff]  ;;  %v34_v14 = vld [vmem:[%s823_s0 + $0x38] sm:$0xff] }
   0x5   :  { %v45_v12 = vpack.c.bf16 %v32_v11, %v31_v10  ;;  %v46_v15 = vpack.c.bf16 %v34_v14, %v33_v13  ;;  %v35_v16 = vld [vmem:[%s823_s0 + $0x40] sm:$0xff]  ;;  %v36_v17 = vld [vmem:[%s823_s0 + $0x48] sm:$0xff]  ;;  %v562_v19 = vld [vmem:[%s824_s3 + $0x38] sm:$0xff] }
   0x6   :  { %117 = vmatpush.bf16.msra.mxu0 %v553_v1  ;;  %v47_v18 = vpack.c.bf16 %v36_v17, %v35_v16  ;;  %253 = vmatpush.bf16.msra.mxu1 %v562_v19  ;;  %v37_v20 = vld [vmem:[%s823_s0 + $0x50] sm:$0xff]  ;;  %v38_v21 = vld [vmem:[%s823_s0 + $0x58] sm:$0xff]  ;;  %v560_v24 = vld [vmem:[%s824_s3 + $0x28] sm:$0xff] }
   0x7   :  { %571 = vmatpush.bf16.msra.mxu3 %v562_v19  ;;  %v48_v22 = vpack.c.bf16 %v38_v21, %v37_v20  ;;  %v561_v23 = vld [vmem:[%s824_s3 + $0x30] sm:$0xff]  ;;  %v559_v25 = vld [vmem:[%s824_s3 + $0x20] sm:$0xff]  ;;  %v40_v27 = vld [vmem:[%s823_s0 + $0x68] sm:$0xff] }
   0x8   :  { %v39_v26 = vld [vmem:[%s823_s0 + $0x60] sm:$0xff]  ;;  %v558_v28 = vld [vmem:[%s824_s3 + $0x18] sm:$0xff]  ;;  %v557_v30 = vld [vmem:[%s824_s3 + $0x10] sm:$0xff] }
   0x9   :  { %v49_v29 = vpack.c.bf16 %v40_v27, %v39_v26  ;;  %v556_v31 = vld [vmem:[%s824_s3 + $0x8] sm:$0xff]  ;;  %v555_v32 = vld [vmem:[%s824_s3] sm:$0xff]  ;;  %v41_v33 = vld [vmem:[%s823_s0 + $0x70] sm:$0xff] }
   0xa   :  { %118 = vmatpush.bf16.msra.mxu0 %v552_v2  ;;  %254 = vmatpush.bf16.msra.mxu1 %v561_v23  ;;  %v42_v34 = vld [vmem:[%s823_s0 + $0x78] sm:$0xff]  ;;  %v725_v37 = vld [vmem:[%s822_s2] ss:$0 sm:$0xff]  ;;  %v569_v16 = vld [vmem:[%s826_s5 + $0x30] sm:$0xff] }
   0xb   :  { %572 = vmatpush.bf16.msra.mxu3 %v561_v23  ;;  %v50_v35 = vpack.c.bf16 %v42_v34, %v41_v33  ;;  %v567_v19 = vld [vmem:[%s826_s5 + $0x20] sm:$0xff]  ;;  %v566_v23 = vld [vmem:[%s826_s5 + $0x18] sm:$0xff]  ;;  %v565_v27 = vld [vmem:[%s826_s5 + $0x10] sm:$0xff] }
   0xe   :  { %119 = vmatpush.bf16.msra.mxu0 %v551_v3  ;;  %255 = vmatpush.bf16.msra.mxu1 %v560_v24 }
   0xf   :  { %573 = vmatpush.bf16.msra.mxu3 %v560_v24 }
  0x11   :  { %479 = vmatmul.msk.bf16.vlgmr.msra.gmra.mxu0 %vm87_vm0, %v43_v6 }
  0x12   :  { %256 = vmatpush.bf16.msra.mxu1 %v559_v25 }
  0x13   :  { %574 = vmatpush.bf16.msra.mxu3 %v559_v25 }
  0x16   :  { %257 = vmatpush.bf16.msra.mxu1 %v558_v28 }
  0x17   :  { %575 = vmatpush.bf16.msra.mxu3 %v558_v28 }
  0x1a   :  { %258 = vmatpush.bf16.msra.mxu1 %v557_v30 }
  0x1b   :  { %576 = vmatpush.bf16.msra.mxu3 %v557_v30  ;;  %v563_v30 = vld [vmem:[%s826_s5] sm:$0xff] }
  0x1e   :  { %259 = vmatpush.bf16.msra.mxu1 %v556_v31 }
  0x1f   :  { %577 = vmatpush.bf16.msra.mxu3 %v556_v31 }
  0x21   :  { %480 = vmatmul.msk.bf16.gmra.mxu0 %vm87_vm0, %v44_v9 }
  0x22   :  { %260 = vmatpush.bf16.msra.mxu1 %v555_v32 }
  0x23   :  { %578 = vmatpush.bf16.msra.mxu3 %v555_v32 }
  0x31   :  { %481 = vmatmul.msk.bf16.gmra.mxu0 %vm87_vm0, %v45_v12  ;;  %v570_v12 = vld [vmem:[%s826_s5 + $0x38] sm:$0xff] }
  0x32   :  { %394 = vmatpush.bf16.msra.mxu2 %v570_v12  ;;  %579 = vmatpush.bf16.msrb.mxu3 %v570_v12 }
  0x36   :  { %395 = vmatpush.bf16.msra.mxu2 %v569_v16  ;;  %580 = vmatpush.bf16.msrb.mxu3 %v569_v16 }
  0x41   :  { %482 = vmatmul.msk.bf16.gmra.mxu0 %vm87_vm0, %v46_v15 }
  0x51   :  { %483 = vmatmul.msk.bf16.gmra.mxu0 %vm87_vm0, %v47_v18  ;;  %v568_v18 = vld [vmem:[%s826_s5 + $0x28] sm:$0xff] }
  0x52   :  { %396 = vmatpush.bf16.msra.mxu2 %v568_v18  ;;  %581 = vmatpush.bf16.msrb.mxu3 %v568_v18 }
  0x56   :  { %397 = vmatpush.bf16.msra.mxu2 %v567_v19  ;;  %582 = vmatpush.bf16.msrb.mxu3 %v567_v19 }
  0x5a   :  { %398 = vmatpush.bf16.msra.mxu2 %v566_v23  ;;  %583 = vmatpush.bf16.msrb.mxu3 %v566_v23 }
  0x5e   :  { %399 = vmatpush.bf16.msra.mxu2 %v565_v27  ;;  %584 = vmatpush.bf16.msrb.mxu3 %v565_v27 }
  0x61   :  { %484 = vmatmul.msk.bf16.gmra.mxu0 %vm87_vm0, %v48_v22 }
  0x71   :  { %485 = vmatmul.msk.bf16.gmra.mxu0 %vm87_vm0, %v49_v29  ;;  %v564_v29 = vld [vmem:[%s826_s5 + $0x8] sm:$0xff] }
  0x72   :  { %400 = vmatpush.bf16.msra.mxu2 %v564_v29  ;;  %585 = vmatpush.bf16.msrb.mxu3 %v564_v29 }
  0x76   :  { %401 = vmatpush.bf16.msra.mxu2 %v563_v30  ;;  %586 = vmatpush.bf16.msrb.mxu3 %v563_v30  ;;  %v589_v30 = vld [vmem:[%s827_s6] ss:$0 sm:$0xff] }
  0x81   :  { %486 = vmatmul.msk.bf16.gmra.mxu0 %vm87_vm0, %v50_v35 }
  0x8e   :  { %v121_v36 = vpop.f32.mrf.mxu0 }
  0x8f   :  { %v122_v38 = vadd.f32 %v725_v37, %v121_v36 }
  0x91   :  { %v161_v41 = vmax.f32 %v122_v38, 0.0 }
  0x96   :  { %v123_v39 = vpop.f32.mrf.mxu0 }
  0x97   :  { %v124_v40 = vadd.f32 %v725_v37, %v123_v39  ;;  %v588_v39 = vld [vmem:[%s825_s4] ss:$0 sm:$0xff] }
  0x99   :  { %v162_v42 = vmax.f32 %v124_v40, 0.0 }
  0x9b   :  { %v177_v43 = vpack.c.bf16 %v162_v42, %v161_v41 }
  0x9d   :  { %261 = vmatmul.bf16.vlgmr.msra.gmra.mxu1 %v177_v43 }
  0x9e   :  { %v126_v44 = vpop.f32.mrf.mxu0 }
  0x9f   :  { %v127_v45 = vadd.f32 %v725_v37, %v126_v44 }
  0xa1   :  { %v163_v48 = vmax.f32 %v127_v45, 0.0 }
  0xa6   :  { %v128_v46 = vpop.f32.mrf.mxu0 }
  0xa7   :  { %v129_v47 = vadd.f32 %v725_v37, %v128_v46 }
  0xa9   :  { %v164_v49 = vmax.f32 %v129_v47, 0.0 }
  0xab   :  { %v178_v50 = vpack.c.bf16 %v164_v49, %v163_v48 }
  0xad   :  { %266 = vmatmul.bf16.gmra.mxu1 %v178_v50 }
  0xae   :  { %v131_v51 = vpop.f32.mrf.mxu0 }
  0xaf   :  { %v132_v52 = vadd.f32 %v725_v37, %v131_v51 }
  0xb1   :  { %v165_v55 = vmax.f32 %v132_v52, 0.0 }
  0xb6   :  { %v133_v53 = vpop.f32.mrf.mxu0 }
  0xb7   :  { %v134_v54 = vadd.f32 %v725_v37, %v133_v53 }
  0xb9   :  { %v166_v56 = vmax.f32 %v134_v54, 0.0 }
  0xbb   :  { %v179_v57 = vpack.c.bf16 %v166_v56, %v165_v55 }
  0xbd   :  { %271 = vmatmul.bf16.gmra.mxu1 %v179_v57 }
  0xbe   :  { %v136_v58 = vpop.f32.mrf.mxu0 }
  0xbf   :  { %v137_v59 = vadd.f32 %v725_v37, %v136_v58 }
  0xc1   :  { %v167_v62 = vmax.f32 %v137_v59, 0.0 }
  0xc6   :  { %v138_v60 = vpop.f32.mrf.mxu0 }
  0xc7   :  { %v139_v61 = vadd.f32 %v725_v37, %v138_v60 }
  0xc9   :  { %v168_v63 = vmax.f32 %v139_v61, 0.0 }
  0xcb   :  { %v180_v0 = vpack.c.bf16 %v168_v63, %v167_v62 }
  0xcd   :  { %276 = vmatmul.bf16.gmra.mxu1 %v180_v0 }
  0xce   :  { %v141_v1 = vpop.f32.mrf.mxu0 }
  0xcf   :  { %v142_v2 = vadd.f32 %v725_v37, %v141_v1 }
  0xd1   :  { %v169_v5 = vmax.f32 %v142_v2, 0.0 }
  0xd6   :  { %v143_v3 = vpop.f32.mrf.mxu0 }
  0xd7   :  { %v144_v4 = vadd.f32 %v725_v37, %v143_v3 }
  0xd9   :  { %v170_v6 = vmax.f32 %v144_v4, 0.0 }
  0xdb   :  { %v181_v7 = vpack.c.bf16 %v170_v6, %v169_v5 }
  0xdd   :  { %281 = vmatmul.bf16.gmra.mxu1 %v181_v7 }
  0xde   :  { %v146_v8 = vpop.f32.mrf.mxu0 }
  0xdf   :  { %v147_v9 = vadd.f32 %v725_v37, %v146_v8 }
  0xe1   :  { %v171_v13 = vmax.f32 %v147_v9, 0.0 }
  0xe6   :  { %v148_v10 = vpop.f32.mrf.mxu0 }
  0xe7   :  { %v149_v11 = vadd.f32 %v725_v37, %v148_v10 }
  0xe9   :  { %v172_v14 = vmax.f32 %v149_v11, 0.0 }
  0xeb   :  { %v182_v15 = vpack.c.bf16 %v172_v14, %v171_v13 }
  0xed   :  { %286 = vmatmul.bf16.gmra.mxu1 %v182_v15 }
  0xee   :  { %v151_v17 = vpop.f32.mrf.mxu0 }
  0xef   :  { %v152_v20 = vadd.f32 %v725_v37, %v151_v17 }
  0xf1   :  { %v173_v24 = vmax.f32 %v152_v20, 0.0 }
  0xf6   :  { %v153_v21 = vpop.f32.mrf.mxu0 }
  0xf7   :  { %v154_v22 = vadd.f32 %v725_v37, %v153_v21 }
  0xf9   :  { %v174_v25 = vmax.f32 %v154_v22, 0.0 }
  0xfb   :  { %v183_v26 = vpack.c.bf16 %v174_v25, %v173_v24 }
  0xfd   :  { %291 = vmatmul.bf16.vlgmr.msra.gmra.mxu3 %v183_v26 }
  0xfe   :  { %v156_v28 = vpop.f32.mrf.mxu0 }
  0xff   :  { %v157_v31 = vadd.f32 %v725_v37, %v156_v28 }
 0x101   :  { %v175_v34 = vmax.f32 %v157_v31, 0.0 }
 0x106   :  { %v158_v32 = vpop.f32.mrf.mxu0 }
 0x107   :  { %v159_v33 = vadd.f32 %v725_v37, %v158_v32 }
 0x109   :  { %v176_v35 = vmax.f32 %v159_v33, 0.0 }
 0x10b   :  { %v184_v36 = vpack.c.bf16 %v176_v35, %v175_v34 }
 0x10d   :  { %296 = vmatmul.bf16.gmra.mxu3 %v184_v36 }
 0x11a   :  { %v262_v38 = vpop.f32.mrf.mxu1 }
 0x11b   :  { %v263_v40 = vadd.f32 %v588_v39, %v262_v38 }
 0x11d   :  { %v302_v43 = vmax.f32 %v263_v40, 0.0 }
 0x122   :  { %v264_v41 = vpop.f32.mrf.mxu1 }
 0x123   :  { %v265_v42 = vadd.f32 %v588_v39, %v264_v41 }
 0x125   :  { %v303_v44 = vmax.f32 %v265_v42, 0.0 }
 0x127   :  { %v318_v45 = vpack.c.bf16 %v303_v44, %v302_v43 }
 0x129   :  { %402 = vmatmul.bf16.vlgmr.msra.gmra.mxu2 %v318_v45 }
 0x12a   :  { %v267_v46 = vpop.f32.mrf.mxu1 }
 0x12b   :  { %v268_v47 = vadd.f32 %v588_v39, %v267_v46 }
 0x12d   :  { %v304_v49 = vmax.f32 %v268_v47, 0.0 }
 0x132   :  { %v269_v48 = vpop.f32.mrf.mxu1 }
 0x133   :  { %v270_v37 = vadd.f32 %v588_v39, %v269_v48 }
 0x135   :  { %v305_v50 = vmax.f32 %v270_v37, 0.0 }
 0x137   :  { %v319_v51 = vpack.c.bf16 %v305_v50, %v304_v49 }
 0x139   :  { %407 = vmatmul.bf16.gmra.mxu2 %v319_v51 }
 0x13a   :  { %v272_v52 = vpop.f32.mrf.mxu1 }
 0x13b   :  { %v273_v53 = vadd.f32 %v588_v39, %v272_v52 }
 0x13d   :  { %v306_v56 = vmax.f32 %v273_v53, 0.0 }
 0x142   :  { %v274_v54 = vpop.f32.mrf.mxu1 }
 0x143   :  { %v275_v55 = vadd.f32 %v588_v39, %v274_v54 }
 0x145   :  { %v307_v57 = vmax.f32 %v275_v55, 0.0 }
 0x147   :  { %v320_v58 = vpack.c.bf16 %v307_v57, %v306_v56 }
 0x149   :  { %412 = vmatmul.bf16.gmra.mxu2 %v320_v58 }
 0x14a   :  { %v277_v59 = vpop.f32.mrf.mxu1 }
 0x14b   :  { %v278_v60 = vadd.f32 %v588_v39, %v277_v59 }
 0x14d   :  { %v308_v63 = vmax.f32 %v278_v60, 0.0 }
 0x152   :  { %v279_v61 = vpop.f32.mrf.mxu1 }
 0x153   :  { %v280_v62 = vadd.f32 %v588_v39, %v279_v61 }
 0x155   :  { %v309_v0 = vmax.f32 %v280_v62, 0.0 }
 0x157   :  { %v321_v1 = vpack.c.bf16 %v309_v0, %v308_v63 }
 0x159   :  { %417 = vmatmul.bf16.gmra.mxu2 %v321_v1 }
 0x15a   :  { %v282_v2 = vpop.f32.mrf.mxu1 }
 0x15b   :  { %v283_v3 = vadd.f32 %v588_v39, %v282_v2 }
 0x15d   :  { %v310_v6 = vmax.f32 %v283_v3, 0.0 }
 0x162   :  { %v284_v4 = vpop.f32.mrf.mxu1 }
 0x163   :  { %v285_v5 = vadd.f32 %v588_v39, %v284_v4 }
 0x165   :  { %v311_v7 = vmax.f32 %v285_v5, 0.0 }
 0x167   :  { %v322_v8 = vpack.c.bf16 %v311_v7, %v310_v6 }
 0x169   :  { %422 = vmatmul.bf16.gmra.mxu2 %v322_v8 }
 0x16a   :  { %v287_v9 = vpop.f32.mrf.mxu1 }
 0x16b   :  { %v288_v10 = vadd.f32 %v588_v39, %v287_v9 }
 0x16d   :  { %v312_v13 = vmax.f32 %v288_v10, 0.0 }
 0x172   :  { %v289_v11 = vpop.f32.mrf.mxu1 }
 0x173   :  { %v290_v12 = vadd.f32 %v588_v39, %v289_v11 }
 0x175   :  { %v313_v14 = vmax.f32 %v290_v12, 0.0 }
 0x177   :  { %v323_v15 = vpack.c.bf16 %v313_v14, %v312_v13 }
 0x179   :  { %427 = vmatmul.bf16.gmra.mxu2 %v323_v15 }
 0x180   :  { %v292_v16 = vpop.f32.mrf.mxu3 }
 0x181   :  { %v293_v17 = vadd.f32 %v588_v39, %v292_v16 }
 0x183   :  { %v314_v20 = vmax.f32 %v293_v17, 0.0 }
 0x188   :  { %v294_v18 = vpop.f32.mrf.mxu3 }
 0x189   :  { %v295_v19 = vadd.f32 %v588_v39, %v294_v18 }
 0x18b   :  { %v315_v21 = vmax.f32 %v295_v19, 0.0 }
 0x18d   :  { %v324_v22 = vpack.c.bf16 %v315_v21, %v314_v20 }
 0x18f   :  { %432 = vmatmul.bf16.vlgmr.msrb.gmra.mxu3 %v324_v22 }
 0x190   :  { %v297_v23 = vpop.f32.mrf.mxu3 }
 0x191   :  { %v298_v24 = vadd.f32 %v588_v39, %v297_v23 }
 0x193   :  { %v316_v27 = vmax.f32 %v298_v24, 0.0 }
 0x198   :  { %v299_v25 = vpop.f32.mrf.mxu3 }
 0x199   :  { %v300_v26 = vadd.f32 %v588_v39, %v299_v25 }
 0x19b   :  { %v317_v28 = vmax.f32 %v300_v26, 0.0 }
 0x19d   :  { %v325_v29 = vpack.c.bf16 %v317_v28, %v316_v27 }
 0x19f   :  { %437 = vmatmul.bf16.gmra.mxu3 %v325_v29 }
 0x1ac   :  { %v403_v31 = vpop.f32.mrf.mxu2 }
 0x1ad   :  { %v404_v32 = vadd.f32 %v589_v30, %v403_v31 }
 0x1af   :  { %443 = vst [vmem:[%s828_s7] sm:$0xff] %v404_v32 }
 0x1b4   :  { %v405_v33 = vpop.f32.mrf.mxu2 }
 0x1b5   :  { %v406_v34 = vadd.f32 %v589_v30, %v405_v33 }
 0x1b7   :  { %444 = vst [vmem:[%s828_s7 + $0x8] sm:$0xff] %v406_v34 }
 0x1bc   :  { %v408_v35 = vpop.f32.mrf.mxu2 }
 0x1bd   :  { %v409_v36 = vadd.f32 %v589_v30, %v408_v35 }
 0x1bf   :  { %445 = vst [vmem:[%s828_s7 + $0x10] sm:$0xff] %v409_v36 }
 0x1c4   :  { %v410_v38 = vpop.f32.mrf.mxu2 }
 0x1c5   :  { %v411_v39 = vadd.f32 %v589_v30, %v410_v38 }
 0x1c7   :  { %446 = vst [vmem:[%s828_s7 + $0x18] sm:$0xff] %v411_v39 }
 0x1cc   :  { %v413_v40 = vpop.f32.mrf.mxu2 }
 0x1cd   :  { %v414_v41 = vadd.f32 %v589_v30, %v413_v40 }
 0x1cf   :  { %447 = vst [vmem:[%s828_s7 + $0x20] sm:$0xff] %v414_v41 }
 0x1d4   :  { %v415_v42 = vpop.f32.mrf.mxu2 }
 0x1d5   :  { %v416_v43 = vadd.f32 %v589_v30, %v415_v42 }
 0x1d7   :  { %448 = vst [vmem:[%s828_s7 + $0x28] sm:$0xff] %v416_v43 }
 0x1dc   :  { %v418_v44 = vpop.f32.mrf.mxu2 }
 0x1dd   :  { %v419_v45 = vadd.f32 %v589_v30, %v418_v44 }
 0x1df   :  { %449 = vst [vmem:[%s828_s7 + $0x30] sm:$0xff] %v419_v45 }
 0x1e4   :  { %v420_v46 = vpop.f32.mrf.mxu2 }
 0x1e5   :  { %v421_v47 = vadd.f32 %v589_v30, %v420_v46 }
 0x1e7   :  { %450 = vst [vmem:[%s828_s7 + $0x38] sm:$0xff] %v421_v47 }
 0x1ec   :  { %v423_v48 = vpop.f32.mrf.mxu2 }
 0x1ed   :  { %v424_v37 = vadd.f32 %v589_v30, %v423_v48 }
 0x1ef   :  { %451 = vst [vmem:[%s828_s7 + $0x40] sm:$0xff] %v424_v37 }
 0x1f4   :  { %v425_v49 = vpop.f32.mrf.mxu2 }
 0x1f5   :  { %v426_v50 = vadd.f32 %v589_v30, %v425_v49 }
 0x1f7   :  { %452 = vst [vmem:[%s828_s7 + $0x48] sm:$0xff] %v426_v50 }
 0x1fc   :  { %v428_v51 = vpop.f32.mrf.mxu2 }
 0x1fd   :  { %v429_v52 = vadd.f32 %v589_v30, %v428_v51 }
 0x1ff   :  { %453 = vst [vmem:[%s828_s7 + $0x50] sm:$0xff] %v429_v52 }
 0x204   :  { %v430_v53 = vpop.f32.mrf.mxu2 }
 0x205   :  { %v431_v54 = vadd.f32 %v589_v30, %v430_v53 }
 0x207   :  { %454 = vst [vmem:[%s828_s7 + $0x58] sm:$0xff] %v431_v54 }
 0x212   :  { %v433_v55 = vpop.f32.mrf.mxu3 }
 0x213   :  { %v434_v56 = vadd.f32 %v589_v30, %v433_v55 }
 0x215   :  { %455 = vst [vmem:[%s828_s7 + $0x60] sm:$0xff] %v434_v56 }
 0x21a   :  { %v435_v57 = vpop.f32.mrf.mxu3 }
 0x21b   :  { %v436_v58 = vadd.f32 %v589_v30, %v435_v57 }
 0x21d   :  { %456 = vst [vmem:[%s828_s7 + $0x68] sm:$0xff] %v436_v58 }
 0x222   :  { %v438_v59 = vpop.f32.mrf.mxu3 }
 0x223   :  { %v439_v60 = vadd.f32 %v589_v30, %v438_v59 }
 0x225   :  { %457 = vst [vmem:[%s828_s7 + $0x70] sm:$0xff] %v439_v60 }
 0x22a   :  { %v440_v61 = vpop.f32.mrf.mxu3 }
 0x22b   :  { %v441_v62 = vadd.f32 %v589_v30, %v440_v61 }
 0x22d   :  { %458 = vst [vmem:[%s828_s7 + $0x78] sm:$0xff] %v441_v62 }

</bundles_post_ra>
